<compile_context>
chip_gen: v5e
topology: v5e:2x2
jax: 0.10.0
libtpu: 0.0.40
codegen_flags: <defaults>
</compile_context>

<pallas_src>
import jax
import jax.numpy as jnp
from jax.experimental import pallas as pl
from jax.experimental.pallas import tpu as pltpu


def gate_act_kernel(params_ref, x_ref, o_ref):
    """Elementwise hot path.

    params_ref (SMEM, f32[4]): [c0, a', b', bias'] where the softmax gate
    coefficient c1 is folded into the polynomial coefficients:
        a'    = c1 * weight_scale * poly_weight[0]
        b'    = c1 * poly_weight[1]
        bias' = c1 * poly_bias[0]

    out = c0 * relu(x) + (a'*x + b')*x + bias'      (Horner form)
    """
    c0 = params_ref[0]
    a = params_ref[1]
    b = params_ref[2]
    bias = params_ref[3]

    x = x_ref[...].astype(jnp.float32)
    relu = jnp.maximum(x, 0.0)
    poly = (a * x + b) * x + bias
    o_ref[...] = (c0 * relu + poly).astype(o_ref.dtype)


def _fold_params(alpha_act, poly_weight, poly_bias, weight_scale):
    """Host-side scalar glue: softmax gate + fold c1 into the polynomial."""
    c = jax.nn.softmax(alpha_act.astype(jnp.float32), axis=0)
    a_fold = c[1] * jnp.float32(weight_scale) * poly_weight[0].astype(jnp.float32)
    b_fold = c[1] * poly_weight[1].astype(jnp.float32)
    bias_fold = c[1] * poly_bias[0].astype(jnp.float32)
    return jnp.stack([c[0], a_fold, b_fold, bias_fold]).astype(jnp.float32)


def _gate_act_jax(x, params):
    """Plain-JAX path for tiny or ragged tensors (fused XLA elementwise)."""
    xf = x.astype(jnp.float32)
    out = (params[0] * jnp.maximum(xf, 0.0)
           + (params[1] * xf + params[2]) * xf + params[3])
    return out.astype(x.dtype)


# Preferred lane widths (multiples of 128); 1024 first — the measured sweet
# spot for lane-dense streaming.
_LANE_CANDIDATES = (1024, 2048, 512, 4096, 256, 8192, 128)


def gate_act(x, alpha_act, poly_weight, poly_bias, weight_scale=1.0,
             *, min_pallas_elems=32768):
    """Pallas implementation of GateAct.forward (gate=True path).

    Preserves the input dtype (compute in f32 inside the kernel).
    """
    # TODO(synk): the PyTorch module also mutates `self.lat_act` (a latency
    # bookkeeping buffer). It does not influence the returned tensor, so it is
    # intentionally not part of this functional implementation.
    params = _fold_params(alpha_act, poly_weight, poly_bias, weight_scale)

    total = x.size
    if total == 0:
        return x

    # Pick a lane width (multiple of 128) that divides the element count so
    # flatten/reshape around the kernel is a free contiguous reshape.
    lanes = None
    for cand in _LANE_CANDIDATES:
        if total % cand == 0:
            lanes = cand
            break

    # Tiny or ragged tensors: plain JAX beats pallas launch + layout glue,
    # and avoids any full-tensor padding copies.
    if lanes is None or total < min_pallas_elems:
        return _gate_act_jax(x, params)

    m = total // lanes
    itemsize = jnp.dtype(x.dtype).itemsize
    # Sublane packing: 8 rows/vreg for 4-byte, 16 for bf16, 32 for int8/fp8.
    pack = max(1, 4 // itemsize)
    sub = 8 * pack
    # ~4 MiB per input tile -> <=16 MiB double-buffered in+out footprint,
    # identical byte budget across dtypes.
    base_tile_m = 1024 * pack

    if m % sub != 0:
        if m <= base_tile_m:
            # Full-array block: exempt from the (8,128) divisibility rule.
            tile_m = m
        else:
            # Aligned tile; trailing partial block is masked by Pallas.
            tile_m = base_tile_m
    elif m <= base_tile_m:
        if m >= 2 * sub:
            # Split >=2 ways so v7x's two TensorCores both get work.
            tile_m = max(sub, ((m // 2) // sub) * sub)
        else:
            tile_m = m
    else:
        tile_m = base_tile_m

    grid = (pl.cdiv(m, tile_m),)

    cost = pl.CostEstimate(
        flops=7 * total,
        transcendentals=0,
        bytes_accessed=2 * total * itemsize,
    )

    slab = x.reshape(m, lanes)  # contiguous reshape: no data movement
    out_slab = pl.pallas_call(
        gate_act_kernel,
        out_shape=jax.ShapeDtypeStruct((m, lanes), x.dtype),
        grid=grid,
        in_specs=[
            # Folded scalar params live whole in SMEM.
            pl.BlockSpec(memory_space=pltpu.MemorySpace.SMEM),
            # Lane-dense, full-row tiles; auto-pipelined (double-buffered).
            pl.BlockSpec((tile_m, lanes), lambda i: (i, 0)),
        ],
        out_specs=pl.BlockSpec((tile_m, lanes), lambda i: (i, 0)),
        compiler_params=pltpu.CompilerParams(
            dimension_semantics=("parallel",),
            # ~16 MiB actual footprint; raise above v5e's 16 MiB scoped
            # default while staying well under v7x's 64 MiB physical VMEM.
            vmem_limit_bytes=32 << 20,
        ),
        cost_estimate=cost,
    )(params, slab)

    return out_slab.reshape(x.shape)


def gate_act_ref(x, alpha_act, poly_weight, poly_bias, weight_scale=1.0):
    """Pure-JAX reference mirroring the PyTorch forward (gate=True)."""
    xf = x.astype(jnp.float32)
    c = jax.nn.softmax(alpha_act.astype(jnp.float32), axis=0)
    r1 = jnp.maximum(xf, 0.0)
    r2 = (jnp.float32(weight_scale) * poly_weight[0] * xf * xf
          + poly_weight[1] * xf + poly_bias[0])
    return (c[0] * r1 + c[1] * r2).astype(x.dtype)


if __name__ == "__main__":
    key = jax.random.PRNGKey(0)

    # Deterministic parameter init matching GateAct.__init__ / PolyAct.__init__.
    alpha_act = jnp.array([0.0, 0.0], dtype=jnp.float32)       # gate logits
    poly_weight = jnp.array([0.005, 1.0], dtype=jnp.float32)   # [a, b]
    poly_bias = jnp.array([0.0], dtype=jnp.float32)            # c
    weight_scale = 1.0

    # Case 1: small NCHW f32 input (module-consistent shape), forced through
    # the Pallas path (single full-array block, lanes=1024).
    N, C, H, W = 2, 4, 16, 16
    x = jax.random.normal(key, (N, C, H, W), dtype=jnp.float32)
    out = jax.block_until_ready(
        gate_act(x, alpha_act, poly_weight, poly_bias, weight_scale,
                 min_pallas_elems=0))
    ref = gate_act_ref(x, alpha_act, poly_weight, poly_bias, weight_scale)
    assert out.shape == x.shape and out.dtype == x.dtype
    assert jnp.allclose(out, ref, atol=1e-6, rtol=1e-6), "f32 mismatch"

    # Case 2: multi-tile grid path (>=2 tiles so v7x's two TCs both get work).
    x2 = jax.random.normal(jax.random.PRNGKey(1), (2, 8, 64, 64),
                           dtype=jnp.float32)
    out2 = jax.block_until_ready(
        gate_act(x2, alpha_act, poly_weight, poly_bias, weight_scale,
                 min_pallas_elems=0))
    ref2 = gate_act_ref(x2, alpha_act, poly_weight, poly_bias, weight_scale)
    assert out2.shape == x2.shape
    assert jnp.allclose(out2, ref2, atol=1e-6, rtol=1e-6), "multi-tile mismatch"

    # Case 3: ragged element count -> plain-JAX fallback (no padding copies).
    x3 = jax.random.normal(jax.random.PRNGKey(2), (2, 3, 7, 5),
                           dtype=jnp.float32)
    out3 = jax.block_until_ready(
        gate_act(x3, alpha_act, poly_weight, poly_bias, weight_scale))
    ref3 = gate_act_ref(x3, alpha_act, poly_weight, poly_bias, weight_scale)
    assert out3.shape == x3.shape
    assert jnp.allclose(out3, ref3, atol=1e-6, rtol=1e-6), "ragged mismatch"

    # Case 4: bf16 I/O preserved (compute in f32 inside the kernel).
    xb = jax.random.normal(jax.random.PRNGKey(3), (N, C, H, W)).astype(jnp.bfloat16)
    outb = jax.block_until_ready(
        gate_act(xb, alpha_act, poly_weight, poly_bias, weight_scale,
                 min_pallas_elems=0))
    refb = gate_act_ref(xb, alpha_act, poly_weight, poly_bias, weight_scale)
    assert outb.dtype == jnp.bfloat16 and outb.shape == xb.shape
    assert jnp.allclose(outb.astype(jnp.float32), refb.astype(jnp.float32),
                        atol=5e-2, rtol=5e-2), "bf16 mismatch"

    print("KERNEL_OK")
</pallas_src>

<mosaic_0001>
module attributes {stable_mosaic.version = 11 : i64} {
  func.func @gate_act_kernel(%arg0: i32, %arg1: memref<4xf32, #tpu.memory_space<smem>>, %arg2: memref<2x1024xf32, #tpu.memory_space<vmem>>, %arg3: memref<2x1024xf32, #tpu.memory_space<vmem>>) attributes {dimension_semantics = [#tpu.dimension_semantics<parallel>], iteration_bounds = array<i64: 1>, scalar_prefetch = 0 : i64, scratch_operands = 0 : i64, tpu.core_type = #tpu.core_type<tc>, window_params = [{transform_indices = @transform_0, window_bounds = array<i64: 4>}, {transform_indices = @transform_1, window_bounds = array<i64: 2, 1024>}, {transform_indices = @transform_2, window_bounds = array<i64: 2, 1024>}]} {
    %c0 = arith.constant 0 : index
    %0 = memref.load %arg1[%c0] : memref<4xf32, #tpu.memory_space<smem>>
    %c1 = arith.constant 1 : index
    %1 = memref.load %arg1[%c1] : memref<4xf32, #tpu.memory_space<smem>>
    %c2 = arith.constant 2 : index
    %2 = memref.load %arg1[%c2] : memref<4xf32, #tpu.memory_space<smem>>
    %c3 = arith.constant 3 : index
    %3 = memref.load %arg1[%c3] : memref<4xf32, #tpu.memory_space<smem>>
    %c0_0 = arith.constant 0 : index
    %c0_1 = arith.constant 0 : index
    %4 = vector.load %arg2[%c0_0, %c0_1] : memref<2x1024xf32, #tpu.memory_space<vmem>>, vector<2x1024xf32>
    %cst = arith.constant 0.000000e+00 : f32
    %5 = vector.broadcast %cst : f32 to vector<2x1024xf32>
    %6 = arith.maximumf %4, %5 : vector<2x1024xf32>
    %7 = vector.broadcast %1 : f32 to vector<2x1024xf32>
    %8 = arith.mulf %7, %4 : vector<2x1024xf32>
    %9 = vector.broadcast %2 : f32 to vector<2x1024xf32>
    %10 = arith.addf %8, %9 : vector<2x1024xf32>
    %11 = arith.mulf %10, %4 : vector<2x1024xf32>
    %12 = vector.broadcast %3 : f32 to vector<2x1024xf32>
    %13 = arith.addf %11, %12 : vector<2x1024xf32>
    %14 = vector.broadcast %0 : f32 to vector<2x1024xf32>
    %15 = arith.mulf %14, %6 : vector<2x1024xf32>
    %16 = arith.addf %15, %13 : vector<2x1024xf32>
    %c0_2 = arith.constant 0 : index
    %c0_3 = arith.constant 0 : index
    %17 = vector.load %arg3[%c0_2, %c0_3] : memref<2x1024xf32, #tpu.memory_space<vmem>>, vector<2x1024xf32>
    tpu.vector_store %arg3[%c0_2, %c0_3], %16 {strides = array<i32>} : memref<2x1024xf32, #tpu.memory_space<vmem>>, vector<2x1024xf32>,
    return
  }
  func.func @transform_0(%arg0: i32) -> i32 {
    %c0_i32 = arith.constant 0 : i32
    %c0_i32_0 = arith.constant 0 : i32
    return %c0_i32 : i32
  }
  func.func @transform_1(%arg0: i32) -> (i32, i32) {
    %c0_i32 = arith.constant 0 : i32
    %c0_i32_0 = arith.constant 0 : i32
    return %arg0, %c0_i32 : i32, i32
  }
  func.func @transform_2(%arg0: i32) -> (i32, i32) {
    %c0_i32 = arith.constant 0 : i32
    %c0_i32_0 = arith.constant 0 : i32
    return %arg0, %c0_i32 : i32, i32
  }
}

</mosaic_0001>

<bundles_post_ra>
// kernel: tpu_custom_call.1
= control target key start
LH: loop header
LB: loop body
LE: loop exit
PB: predicated region body
PF: predicated region fallthrough
CT: control target
= control target key end

     0   :  { %7 = vsyncpa [#allocation5], 0  ;;  %s182_s0 = inlined_call_operand.hbm [shape: f32[4], index: 0, kind: input, shape index: {}]   ;;  %s183_s1 = inlined_call_operand.hbm [shape: f32[2,1024], index: 1, kind: input, shape index: {}]   ;;  %s184_s2 = inlined_call_operand.hbm [shape: f32[2,1024], index: 2, kind: output, shape index: {}]  }
   0x1   :  { %8 = vsyncpa [#allocation3], 0 }
   0x2   :  { %9 = vsyncpa [#allocation4], 0  ;;  %s15_s11 = sshll.u32 %s182_s0, 4  ;;  %s24_s14 = sshll.u32 %s183_s1, 4  ;;  %s16_s11 = int_to_ptr.hbm [resolvable:$true] %s15_s11  ;;  %s25_s14 = int_to_ptr.hbm [resolvable:$true] %s24_s14 }
   0x3   :  { %s155_s15 = smov [#allocation2]   ;;  %s156_s16 = smov [#allocation6]  }
   0x4   :  { %18 = dma.hbm_to_smem %s16_s11, 16, %s155_s15, [#allocation5]  }
   0x5   :  { %s26_s17 = sshll.u32 %s156_s16, 4  ;;  %s27_s17 = int_to_ptr.vmem [resolvable:$true] %s26_s17 }
   0x6   :  { %29 = dma.hbm_to_vmem [thread:$0]  %s25_s14, 256, %s27_s17, [#allocation3]  }
   0x7   :  { %149 = dma.done.wait [#allocation5], 16  }
   0x8   :  { %150 = vsyncadd [#allocation5], 4294967280 }
   0x9   :  { %151 = dma.done.wait [#allocation3], 256  }
   0xa   :  { %152 = vsyncadd [#allocation3], 4294967040 }
   0xb   :  { %38 = sfence }
   0xc   :  { %s39_s18 = sld [smem:[#allocation2]]  ;;  %v43_v0 = vld [vmem:[#allocation6] sm:$0xff]  ;;  %v44_v1 = vld [vmem:[#allocation6 + $0x8] sm:$0xff]  ;;  %s157_s1 = smov [#allocation7]  }
   0xd   :  { %s83_s19 = sld [smem:[#allocation2 + $0x1]]  ;;  %v45_v2 = vmax.f32 %v43_v0, 0.0  ;;  %v46_v6 = vmax.f32 %v44_v1, 0.0  ;;  %s70_s21 = sshll.u32 %s157_s1, 4  ;;  %s71_s21 = int_to_ptr.vmem [resolvable:$true] %s70_s21 }
   0xe   :  { %s84_s0 = sld [smem:[#allocation2 + $0x2]]  ;;  %s72_s24 = sshll.u32 %s184_s2, 4  ;;  %s73_s24 = int_to_ptr.hbm [resolvable:$true] %s72_s24 }
   0xf   :  { %s85_s20 = sld [smem:[#allocation2 + $0x3]] }
  0x12   :  { %v58_v8 = vstv %s39_s18 }
  0x13   :  { %v47_v3 = vstv %s83_s19  ;;  %v59_v13 = vmul.f32 %v58_v8, %v45_v2  ;;  %v60_v15 = vmul.f32 %v58_v8, %v46_v6 }
  0x14   :  { %v48_v4 = vmul.f32 %v47_v3, %v43_v0  ;;  %v50_v5 = vstv %s84_s0  ;;  %v49_v7 = vmul.f32 %v47_v3, %v44_v1 }
  0x15   :  { %v55_v11 = vstv %s85_s20 }
  0x16   :  { %v51_v9 = vadd.f32 %v50_v5, %v48_v4  ;;  %v52_v10 = vadd.f32 %v50_v5, %v49_v7 }
  0x18   :  { %v53_v12 = vmul.f32 %v51_v9, %v43_v0  ;;  %v54_v14 = vmul.f32 %v52_v10, %v44_v1 }
  0x1a   :  { %v56_v16 = vadd.f32 %v55_v11, %v53_v12  ;;  %v57_v17 = vadd.f32 %v55_v11, %v54_v14 }
  0x1c   :  { %v61_v18 = vadd.f32 %v59_v13, %v56_v16  ;;  %v62_v19 = vadd.f32 %v60_v15, %v57_v17 }
  0x1e   :  { %63 = vst [vmem:[#allocation7] sm:$0xff] %v61_v18 }
  0x1f   :  { %64 = vst [vmem:[#allocation7 + $0x8] sm:$0xff] %v62_v19 }
  0x20   :  { %75 = dma.vmem_to_hbm [thread:$0]  %s71_s21, 256, %s73_s24, [#allocation4]  }
  0x21   :  { %153 = dma.done.wait [#allocation4], 256  }
  0x22   :  { %154 = vsyncadd [#allocation4], 4294967040 }
  0x23   :  { %80 = vsyncpa [#allocation3], 1 }
  0x24   :  { %81 = vsyncpa [#allocation4], 1 }
  0x25   :  { %82 = vsyncpa [#allocation5], 1 }

</bundles_post_ra>
